<compile_context>
chip_gen: v5e
topology: v5e:2x2
jax: 0.10.0
libtpu: 0.0.40
codegen_flags: <defaults>
</compile_context>

<pallas_src>
import jax
import jax.numpy as jnp
import numpy as np
from jax.experimental import pallas as pl
from jax.experimental.pallas import tpu as pltpu

C_IN, C_OUT = 3, 8


def _conv1x1_hardsigmoid_kernel(x_ref, w_ref, b_ref, o_ref):
    # x_ref: (C_in, M)   w_ref: (C_out, C_in)   b_ref: (C_out, 1)   o_ref: (C_out, M)
    # W and b already have the hard-sigmoid affine folded in (W/6, (b+3)/6),
    # so the epilogue is just a clamp to [0, 1].
    y = jnp.dot(w_ref[...], x_ref[...], preferred_element_type=jnp.float32)
    y = y + b_ref[...]
    y = jnp.clip(y, 0.0, 1.0)
    o_ref[...] = y.astype(o_ref.dtype)


def model_forward(x, weight, bias):
    """x: (N, 3, H, W) f32; weight: (8, 3, 1, 1); bias: (8,). Returns (N, 8, H+2, W+2)."""
    n, cin, h, w = x.shape
    cout = weight.shape[0]

    # Conv padding=1 with a 1x1 kernel: zero-pad spatially; border pixels then
    # produce hardsigmoid(bias) inside the kernel automatically.
    xp = jnp.pad(x, ((0, 0), (0, 0), (1, 1), (1, 1)))
    hp, wp = h + 2, w + 2
    mp = hp * wp

    # NCHW flatten: channels stay on the sublane-ish axis, pixels go to lanes.
    xm = xp.reshape(n, cin, mp)                       # (N, C_in, M) — no transpose

    # Fold hard-sigmoid:  clip((Wx + b + 3)/6, 0, 1) == clip((W/6)x + (b+3)/6, 0, 1)
    wmat = (weight.reshape(cout, cin) * (1.0 / 6.0)).astype(x.dtype)   # (C_out, C_in)
    bmat = ((bias + 3.0) * (1.0 / 6.0)).reshape(cout, 1).astype(x.dtype)  # (C_out, 1)

    out = pl.pallas_call(
        _conv1x1_hardsigmoid_kernel,
        out_shape=jax.ShapeDtypeStruct((n, cout, mp), x.dtype),
        grid_spec=pltpu.PrefetchScalarGridSpec(
            num_scalar_prefetch=0,
            grid=(n,),                                # one step per batch element
            in_specs=[
                pl.BlockSpec((None, cin, mp), lambda i: (i, 0, 0)),   # (C_in, M) tile
                pl.BlockSpec((cout, cin), lambda i: (0, 0)),          # weights, resident
                pl.BlockSpec((cout, 1), lambda i: (0, 0)),            # bias, resident
            ],
            out_specs=pl.BlockSpec((None, cout, mp), lambda i: (i, 0, 0)),
        ),
        compiler_params=pltpu.CompilerParams(
            dimension_semantics=("parallel",),        # lets v7x shard over its 2 TCs
        ),
    )(xm, wmat, bmat)

    # Free (layout-preserving) reshape back to NCHW padded spatial.
    return out.reshape(n, cout, hp, wp)


def _reference(x, weight, bias):
    """Plain-JAX reference of the original module's forward pass (for verification)."""
    xp = jnp.pad(x, ((0, 0), (0, 0), (1, 1), (1, 1)))
    y = jnp.einsum("nchw,oc->nohw", xp, weight.reshape(C_OUT, C_IN)) + bias[None, :, None, None]
    y = y + 3.0
    y = jnp.clip(y, 0.0, 6.0)
    return y / 6.0


if __name__ == "__main__":
    key = jax.random.PRNGKey(0)
    kx, kw, kb = jax.random.split(key, 3)

    # Small shapes consistent with the module: N=2, C_in=3, spatial=16.
    x = jax.random.normal(kx, (2, C_IN, 16, 16), dtype=jnp.float32)

    # Deterministic parameter init (Conv2d(3, 8, 1) -> weight (8,3,1,1), bias (8,)).
    fan_in = C_IN * 1 * 1
    bound = 1.0 / np.sqrt(fan_in)
    weight = jax.random.uniform(kw, (C_OUT, C_IN, 1, 1), minval=-bound, maxval=bound,
                                dtype=jnp.float32)
    bias = jax.random.uniform(kb, (C_OUT,), minval=-bound, maxval=bound, dtype=jnp.float32)

    out = jax.block_until_ready(model_forward(x, weight, bias))
    ref = jax.block_until_ready(_reference(x, weight, bias))

    assert out.shape == (2, C_OUT, 18, 18), out.shape
    np.testing.assert_allclose(np.asarray(out), np.asarray(ref), rtol=1e-5, atol=1e-5)

    print("KERNEL_OK")
</pallas_src>

<mosaic_0001>
module attributes {stable_mosaic.version = 11 : i64} {
  func.func @_conv1x1_hardsigmoid_kernel(%arg0: i32, %arg1: memref<1x3x324xf32, #tpu.memory_space<vmem>>, %arg2: memref<8x3xf32, #tpu.memory_space<vmem>>, %arg3: memref<8x1xf32, #tpu.memory_space<vmem>>, %arg4: memref<1x8x324xf32, #tpu.memory_space<vmem>>) attributes {dimension_semantics = [#tpu.dimension_semantics<parallel>], iteration_bounds = array<i64: 2>, scalar_prefetch = 0 : i64, scratch_operands = 0 : i64, tpu.core_type = #tpu.core_type<tc>, window_params = [{transform_indices = @transform_0, window_bounds = array<i64: 1, 3, 324>}, {pipeline_mode = #tpu.pipeline_mode<synchronous>, transform_indices = @transform_1, window_bounds = array<i64: 8, 3>}, {pipeline_mode = #tpu.pipeline_mode<synchronous>, transform_indices = @transform_2, window_bounds = array<i64: 8, 1>}, {transform_indices = @transform_3, window_bounds = array<i64: 1, 8, 324>}]} {
    %c0 = arith.constant 0 : index
    %c0_0 = arith.constant 0 : index
    %0 = vector.load %arg2[%c0, %c0_0] : memref<8x3xf32, #tpu.memory_space<vmem>>, vector<8x3xf32>
    %c0_1 = arith.constant 0 : index
    %c0_2 = arith.constant 0 : index
    %c0_3 = arith.constant 0 : index
    %1 = vector.load %arg1[%c0_1, %c0_2, %c0_3] : memref<1x3x324xf32, #tpu.memory_space<vmem>>, vector<1x3x324xf32>
    %2 = vector.shape_cast %1 : vector<1x3x324xf32> to vector<3x324xf32>
    %cst = arith.constant dense<0.000000e+00> : vector<8x324xf32>
    %3 = tpu.matmul %0, %2, %cst {dimension_numbers = #tpu.dot_dimension_numbers<[1], [0], [0], [1], [0, 0, 1, 1], [], []>} : vector<8x3xf32>, vector<3x324xf32>, vector<8x324xf32> -> vector<8x324xf32>
    %c0_4 = arith.constant 0 : index
    %c0_5 = arith.constant 0 : index
    %4 = vector.load %arg3[%c0_4, %c0_5] : memref<8x1xf32, #tpu.memory_space<vmem>>, vector<8x1xf32>
    %5 = vector.broadcast %4 : vector<8x1xf32> to vector<8x324xf32>
    %6 = arith.addf %3, %5 : vector<8x324xf32>
    %cst_6 = arith.constant 0.000000e+00 : f32
    %cst_7 = arith.constant 1.000000e+00 : f32
    %7 = vector.broadcast %cst_6 : f32 to vector<8x324xf32>
    %8 = arith.maximumf %7, %6 : vector<8x324xf32>
    %9 = vector.broadcast %cst_7 : f32 to vector<8x324xf32>
    %10 = arith.minimumf %9, %8 : vector<8x324xf32>
    %c0_8 = arith.constant 0 : index
    %c0_9 = arith.constant 0 : index
    %c0_10 = arith.constant 0 : index
    %11 = vector.load %arg4[%c0_8, %c0_9, %c0_10] : memref<1x8x324xf32, #tpu.memory_space<vmem>>, vector<1x8x324xf32>
    %12 = vector.shape_cast %11 : vector<1x8x324xf32> to vector<8x324xf32>
    %13 = vector.shape_cast %10 : vector<8x324xf32> to vector<1x8x324xf32>
    tpu.vector_store %arg4[%c0_8, %c0_9, %c0_10], %13 {strides = array<i32>} : memref<1x8x324xf32, #tpu.memory_space<vmem>>, vector<1x8x324xf32>,
    return
  }
  func.func @transform_0(%arg0: i32) -> (i32, i32, i32) {
    %c0_i32 = arith.constant 0 : i32
    %c0_i32_0 = arith.constant 0 : i32
    %c0_i32_1 = arith.constant 0 : i32
    return %arg0, %c0_i32, %c0_i32_0 : i32, i32, i32
  }
  func.func @transform_1(%arg0: i32) -> (i32, i32) {
    %c0_i32 = arith.constant 0 : i32
    %c0_i32_0 = arith.constant 0 : i32
    %c0_i32_1 = arith.constant 0 : i32
    return %c0_i32, %c0_i32_0 : i32, i32
  }
  func.func @transform_2(%arg0: i32) -> (i32, i32) {
    %c0_i32 = arith.constant 0 : i32
    %c0_i32_0 = arith.constant 0 : i32
    %c0_i32_1 = arith.constant 0 : i32
    return %c0_i32, %c0_i32_0 : i32, i32
  }
  func.func @transform_3(%arg0: i32) -> (i32, i32, i32) {
    %c0_i32 = arith.constant 0 : i32
    %c0_i32_0 = arith.constant 0 : i32
    %c0_i32_1 = arith.constant 0 : i32
    return %arg0, %c0_i32, %c0_i32_0 : i32, i32, i32
  }
}

</mosaic_0001>

<bundles_post_ra>
// kernel: tpu_custom_call.1
= control target key start
LH: loop header
LB: loop body
LE: loop exit
PB: predicated region body
PF: predicated region fallthrough
CT: control target
= control target key end

     0   :  { %8 = vsyncpa [#allocation3], 0  ;;  %s577_s0 = inlined_call_operand.vmem [shape: f32[2,3,324], index: 0, kind: input, shape index: {}]   ;;  %s578_s1 = inlined_call_operand.vmem [shape: f32[8,3], index: 1, kind: input, shape index: {}]   ;;  %s579_s2 = inlined_call_operand.vmem [shape: f32[8,1], index: 2, kind: input, shape index: {}]   ;;  %s580_s3 = inlined_call_operand.hbm [shape: f32[2,8,324], index: 3, kind: output, shape index: {}]  }
   0x1   :  { %10 = vsyncpa [#allocation3 + $0x1], 0  ;;  %s486_s12 = smov 0   ;;  %s488_s13 = smov 0  }
   0x2   :  { %s490_s14 = smov 0   ;;  %s492_s15 = smov 0  }
   0x3 LB: > { %s507_s16 = sadd.s32 4294967295, %s463_s15   ;;  %s343_s17 = sadd.s32 4294967294, %s463_s15   ;;  %s463_s15 = sphi %s492_s15, %s586_s15   ;;  %s459_s14 = sphi %s490_s14, %s585_s14   ;;  %s455_s13 = sphi %s488_s13, %s584_s13   ;;  %s451_s12 = sphi %s486_s12, %s583_s12  }
   0x4   : > { %s511_s18 = sadd.s32 1, %s463_s15   ;;  %s91_s19 = sadd.s32 1, %s459_s14 }
   0x5   : > { %s88_s20 = ssub.s32 %s463_s15, %s511_s18  ;;  %p101_p0 = scmp.ne.s32.totalorder %s459_s14, %s455_s13 }
   0x6   : > { %p89_p1 = scmp.eq.s32.totalorder %s88_s20, 0  ;;  %p102_p2 = scmp.eq.s32.totalorder %s507_s16, 1 }
   0x7   : > { %p107_p3 = scmp.ne.s32.totalorder %s455_s13, %s451_s12  ;;  %p108_p4 = scmp.eq.s32.totalorder %s343_s17, 1 }
   0x8   : > { %s522_s21 = scalar_select %p89_p1, %s459_s14, %s91_s19  }
   0x9   : > { %p524_p5 = por %p102_p2, %p101_p0  ;;  %p528_p6 = por %p108_p4, %p107_p3 }
   0xa   : > { %p346_p7 = scmp.ge.s32.totalorder %s463_s15, 1  ;;  %p140_p8 = scmp.lt.s32.totalorder %s463_s15, 3 }
   0xc   : > { %p141_p9 = pnand %p346_p7, %p140_p8 }
   0xd   : > { %p164_p10 = scmp.lt.s32.totalorder (!%p141_p9), %s507_s16, 1  ;;  %s161_s6 = sand.u32 (!%p141_p9), 1, %s455_s13  }
   0xe   : > { %144 = sbr.rel (%p141_p9) target bundleno = 175 (0xaf), region = 32  ;;  %s421_s28 = scalar_lea.hbm (!%p141_p9), %s580_s3, 48 }
   0xf   : > { %s357_s7 = smul.u32 (!%p141_p9), 24, %s161_s6 }
  0x10   : > { %s359_s8 = smul.u32 (!%p141_p9), 24, %s507_s16 }
  0x11   : > { %s163_s17 = scalar_lea.vmem (!%p141_p9), [#allocation2], %s357_s7 }
  0x12   : > { %s279_s11 = scalar_lea.hbm (!%p141_p9), %s580_s3, %s359_s8  ;;  %s281_s19 = sshll.u32 (!%p141_p9), %s163_s17, 4  ;;  %s282_s19 = int_to_ptr.vmem [resolvable:$true] %s281_s19 }
  0x13   : > { %v172_v0 = vld [vmem:[%s579_s2] sm:$0xff]  ;;  %v465_v1 = vmov 0   ;;  %s165_s26 = scalar_select %p164_p10, %s507_s16, 1  ;;  %vm190_vm0 = vcmask 1042432   ;;  %vm186_vm1 = vcmask 23552   ;;  %vm265_vm2 = vcmask 556032  }
  0x14   : > { %400 = vset.pattern.permute.xlu0 %v465_v1  ;;  %v169_v4 = vld [vmem:[%s578_s1] sm:$0xff]  ;;  %s283_s20 = sshll.u32 %s279_s11, 4  ;;  %s268_s16 = scalar_lea.sflag [#allocation3], %s161_s6  ;;  %s284_s20 = int_to_ptr.hbm [resolvable:$true] %s283_s20 }
  0x15   : > { %175 = vperm.xlu0 %400, %v172_v0   ;;  %s358_s27 = smul.u32 12, %s165_s26  ;;  %s415_s24 = sshra.s32 %s284_s20, 4  ;;  %s416_s24 = int_to_ptr.hbm [resolvable:$true] %s415_s24 }
  0x16   : > { %s417_s25 = scalar_lea.hbm %s416_s24, 24  ;;  %p422_p0 = scmp.lt.s32.totalorder %s416_s24, %s580_s3 }
  0x17   : > { %s168_s30 = scalar_lea.vmem %s577_s0, %s358_s27  ;;  %p418_p11 = scmp.ne.s32.totalorder %s416_s24, %s417_s25 }
  0x18   : > { %v171_v2 = vld [vmem:[%s168_s30 + $0x8] sm:$0x7]  ;;  %v170_v3 = vld [vmem:[%s168_s30] sm:$0x77]  ;;  %p423_p1 = scmp.lt.s32.totalorder %s421_s28, %s417_s25 }
  0x19   : > { %182 = vst [vmem:[#allocation1 + $0x10] ss:$2 sm:$0xff] %v171_v2  ;;  %p419_p12 = pnand %p418_p11, %p524_p5 }
  0x1a   : > { %180 = vst [vmem:[#allocation1] ss:$2 sm:$0xff] %v170_v3  ;;  %p424_p2 = por %p423_p1, %p422_p0 }
  0x1b   : > { %p420_p13 = pneg %p419_p12 }
  0x1d   : > { %p425_p3 = pnand %p424_p2, %p420_p13 }
  0x20   : > { %v185_v5 = vld.sshfl [vmem:[#allocation1 + $0x10] sm:$0xff pattern:$0x75316420] }
  0x21   : > { %352 = vmatpush.msk.msra.mxu2 %vm190_vm0, %v185_v5  ;;  %v183_v6 = vld.sshfl [vmem:[#allocation1] sm:$0xff pattern:$0x75316420]  ;;  %v184_v7 = vld.sshfl [vmem:[#allocation1 + $0x8] sm:$0xff pattern:$0x75316420] }
  0x22   : > { %353 = vmatmul.msk.f32.vlgmr.msra.gmra.mxu2 %vm186_vm1, %v169_v4  ;;  %348 = vmatpush.msk.msra.mxu0 %vm190_vm0, %v183_v6 }
  0x23   : > { %350 = vmatpush.msk.msra.mxu1 %vm190_vm0, %v184_v7  ;;  %349 = vmatmul.msk.f32.vlgmr.msra.gmra.mxu0 %vm186_vm1, %v169_v4 }
  0x24   : > { %351 = vmatmul.msk.f32.vlgmr.msra.gmra.mxu1 %vm186_vm1, %v169_v4 }
  0x87   : > { %v176_v8 = vpop.permute.xlu0 %175 }
  0xa0   : > { %v214_v9 = vpop.f32.mrf.mxu0 }
  0xa1   : > { %v215_v10 = vadd.f32 %v214_v9, %v176_v8  ;;  %v234_v11 = vpop.f32.mrf.mxu1 }
  0xa2   : > { %v235_v12 = vadd.f32 %v234_v11, %v176_v8 }
  0xa3   : > { %v257_v13 = vmax.f32 %v215_v10, 0.0 }
  0xa4   : > { %v258_v14 = vmax.f32 %v235_v12, 0.0 }
  0xa5   : > { %v260_v15 = vmin.f32 %v257_v13, 1.0  ;;  %v254_v16 = vpop.f32.mrf.mxu2 }
  0xa6   : > { %v261_v17 = vmin.f32 %v258_v14, 1.0  ;;  %v255_v18 = vadd.f32 %v254_v16, %v176_v8 }
  0xa7   : > { %263 = vst [vmem:[%s163_s17] sm:$0xff] %v260_v15 }
  0xa8   : > { %264 = vst [vmem:[%s163_s17 + $0x8] sm:$0xff] %v261_v17  ;;  %v259_v19 = vmax.f32 %v255_v18, 0.0 }
  0xaa   : > { %v262_v20 = vmin.f32 %v259_v19, 1.0 }
  0xac   : > { %266 = vst.msk [vmem:[%s163_s17 + $0x10] sm:$0xff] %vm265_vm2, %v262_v20 }
  0xad   : > { %428 = shalt.err (!%p425_p3)
}
  0xae   : > { %360 = dma.vmem_to_hbm [thread:$0]  (%p524_p5), %s282_s19, 384, %s284_s20, %s268_s16  }
  0xaf PF: > { %p366_p4 = scmp.ge.s32.totalorder %s463_s15, 2  ;;  %s295_s4 = sand.u32 1, %s451_s12  }
  0xb0   : > { %s296_s5 = scalar_lea.sflag [#allocation3], %s295_s4 }
  0xb1   : > { %p363_p7 = pnand %p366_p4, %p528_p6 }
  0xb3   : > { %p364_p8 = pneg %p363_p7 }
  0xb5   : > { %446 = dma.done.wait (%p364_p8), %s296_s5, 384  }
  0xb6   : > { %448 = vsyncadd (%p364_p8), %s296_s5, 4294966912  ;;  %p13_p9 = scmp.ge.s32.totalorder %s511_s18, 4   ;;  %s583_s12 = smov %s455_s13 }
  0xb7   : > { %s584_s13 = smov %s459_s14  ;;  %s585_s14 = smov %s522_s21 }
  0xb8   : > { %s586_s15 = smov %s511_s18  ;;  %15 = sbr.rel (!%p13_p9) target bundleno = 3 (0x3), region = 68 }
  0xbd   :  { %302 = vsyncpa [#allocation3], 1 }
  0xbe   :  { %304 = vsyncpa [#allocation3 + $0x1], 1 }

</bundles_post_ra>
